<compile_context>
chip_gen: v7x
topology: tpu7x:2x2x1
jax: 0.10.0
libtpu: 0.0.40
codegen_flags: <defaults>
</compile_context>

<pallas_src>
import functools

import jax
import jax.numpy as jnp
from jax.experimental import pallas as pl
from jax.experimental.pallas import tpu as pltpu

_LANE = 128  # TPU lane width


def _fused_mlp_kernel(*refs, num_layers, negative_slope, apply_sigmoid):
    """refs = (x_ref, w0_ref, b0_ref, w1_ref, b1_ref, ..., o_ref).

    Chains num_layers x (matmul + bias + LeakyReLU) with intermediates kept
    in vregs; optional sigmoid on the final activation.
    """
    x_ref = refs[0]
    o_ref = refs[-1]

    y = x_ref[...]                                   # (TB, d_in0) f32
    for k in range(num_layers):                      # unrolled at trace time
        w = refs[1 + 2 * k][...]                     # (d_in, d_out), VMEM-resident
        b = refs[2 + 2 * k][...]                     # (1, d_out), read once per step
        y = jnp.dot(y, w, preferred_element_type=jnp.float32) + b
        y = jnp.where(y > 0, y, negative_slope * y)  # LeakyReLU(0.3), f32 VPU path
    if apply_sigmoid:
        y = jax.nn.sigmoid(y)                        # EUP transcendental
    o_ref[...] = y.astype(o_ref.dtype)


def _choose_batch_tile(batch):
    # Small batches: single grid step, full-extent block (no (8,128) issue).
    # Large batches: 512-row tiles (multiple of 8, ~85% HBM roofline regime),
    # comfortably inside v7x's 32 MiB scoped VMEM even when double-buffered.
    return batch if batch <= 512 else 512


def init_simple_network_params(sizes, key):
    """Deterministic init mirroring torch.nn.Linear defaults:
    U(-1/sqrt(d_in), 1/sqrt(d_in)) for both weight and bias."""
    params = []
    for d_in, d_out in zip(sizes[:-1], sizes[1:]):
        key, kw, kb = jax.random.split(key, 3)
        bound = 1.0 / jnp.sqrt(jnp.float32(d_in))
        # Stored as (d_in, d_out) == W^T of the PyTorch (d_out, d_in) weight.
        w = jax.random.uniform(kw, (d_in, d_out), jnp.float32, -bound, bound)
        b = jax.random.uniform(kb, (1, d_out), jnp.float32, -bound, bound)
        params.append((w, b))
    return params


def simple_network_forward(x, params, final_sigmoid=False, negative_slope=0.3):
    """Fused forward pass of SimpleNetwork in a single pallas_call."""
    batch, d_in0 = x.shape
    num_layers = len(params)
    d_out_last = params[-1][0].shape[1]

    # --- lane-dense final output: pad last layer's output dim to 128-multiple.
    d_out_pad = pl.cdiv(d_out_last, _LANE) * _LANE
    if d_out_pad != d_out_last:
        w_last, b_last = params[-1]
        pad = d_out_pad - d_out_last
        params = list(params[:-1]) + [(
            jnp.pad(w_last, ((0, 0), (0, pad))),
            jnp.pad(b_last, ((0, 0), (0, pad))),
        )]

    # --- grid over batch; weights/biases resident via constant index_map.
    tb = _choose_batch_tile(batch)
    grid = (pl.cdiv(batch, tb),)

    flat_params = []
    in_specs = [pl.BlockSpec((tb, d_in0), lambda i: (i, 0))]
    for w, b in params:
        flat_params.extend([w, b])
        in_specs.append(pl.BlockSpec(w.shape, lambda i: (0, 0)))
        in_specs.append(pl.BlockSpec(b.shape, lambda i: (0, 0)))
    out_spec = pl.BlockSpec((tb, d_out_pad), lambda i: (i, 0))

    # --- advisory cost estimate so XLA overlaps this small custom call.
    flops = 2 * batch * sum(w.shape[0] * w.shape[1] for w, _ in params)
    bytes_accessed = 4 * (x.size
                          + sum(w.size + b.size for w, b in params)
                          + batch * d_out_pad)
    transcendentals = batch * d_out_pad if final_sigmoid else 0

    kernel = functools.partial(
        _fused_mlp_kernel,
        num_layers=num_layers,
        negative_slope=negative_slope,
        apply_sigmoid=final_sigmoid,
    )

    out = pl.pallas_call(
        kernel,
        out_shape=jax.ShapeDtypeStruct((batch, d_out_pad), jnp.float32),
        grid=grid,
        in_specs=in_specs,
        out_specs=out_spec,
        compiler_params=pltpu.CompilerParams(
            dimension_semantics=("parallel",),   # batch axis -> v7x dual-TC sharding
        ),
        cost_estimate=pl.CostEstimate(
            flops=flops,
            transcendentals=transcendentals,
            bytes_accessed=bytes_accessed,
        ),
    )(x, *flat_params)

    if d_out_pad != d_out_last:
        out = out[:, :d_out_last]
    return out


def _reference_forward(x, params, final_sigmoid=False):
    res = x
    for w, b in params:
        res = res @ w + b
        res = jnp.where(res > 0, res, 0.3 * res)
    if final_sigmoid:
        res = jax.nn.sigmoid(res)
    return res


if __name__ == "__main__":
    sizes = [32, 64, 48, 16]   # MLP layer widths: 32 -> 64 -> 48 -> 16
    batch = 8

    key = jax.random.PRNGKey(0)
    key, kx = jax.random.split(key)
    x = jax.random.normal(kx, (batch, sizes[0]), jnp.float32)
    params = init_simple_network_params(sizes, key)

    out = simple_network_forward(x, params, final_sigmoid=False)
    out = jax.block_until_ready(out)

    out_sig = simple_network_forward(x, params, final_sigmoid=True)
    out_sig = jax.block_until_ready(out_sig)

    # Correctness check vs. plain-JAX reference.
    ref = _reference_forward(x, params, final_sigmoid=False)
    ref_sig = _reference_forward(x, params, final_sigmoid=True)
    assert out.shape == (batch, sizes[-1])
    assert jnp.allclose(out, ref, atol=1e-5, rtol=1e-5)
    assert jnp.allclose(out_sig, ref_sig, atol=1e-5, rtol=1e-5)

    print("KERNEL_OK")
</pallas_src>

<mosaic_0001>
module attributes {stable_mosaic.version = 11 : i64} {
  func.func @_fused_mlp_kernel(%arg0: i32, %arg1: memref<8x32xf32, #tpu.memory_space<vmem>>, %arg2: memref<32x64xf32, #tpu.memory_space<vmem>>, %arg3: memref<1x64xf32, #tpu.memory_space<vmem>>, %arg4: memref<64x48xf32, #tpu.memory_space<vmem>>, %arg5: memref<1x48xf32, #tpu.memory_space<vmem>>, %arg6: memref<48x128xf32, #tpu.memory_space<vmem>>, %arg7: memref<1x128xf32, #tpu.memory_space<vmem>>, %arg8: memref<8x128xf32, #tpu.memory_space<vmem>>) attributes {dimension_semantics = [#tpu.dimension_semantics<parallel>], iteration_bounds = array<i64: 1>, scalar_prefetch = 0 : i64, scratch_operands = 0 : i64, tpu.core_type = #tpu.core_type<tc>, window_params = [{transform_indices = @transform_0, window_bounds = array<i64: 8, 32>}, {pipeline_mode = #tpu.pipeline_mode<synchronous>, transform_indices = @transform_1, window_bounds = array<i64: 32, 64>}, {pipeline_mode = #tpu.pipeline_mode<synchronous>, transform_indices = @transform_2, window_bounds = array<i64: 1, 64>}, {pipeline_mode = #tpu.pipeline_mode<synchronous>, transform_indices = @transform_3, window_bounds = array<i64: 64, 48>}, {pipeline_mode = #tpu.pipeline_mode<synchronous>, transform_indices = @transform_4, window_bounds = array<i64: 1, 48>}, {pipeline_mode = #tpu.pipeline_mode<synchronous>, transform_indices = @transform_5, window_bounds = array<i64: 48, 128>}, {pipeline_mode = #tpu.pipeline_mode<synchronous>, transform_indices = @transform_6, window_bounds = array<i64: 1, 128>}, {transform_indices = @transform_7, window_bounds = array<i64: 8, 128>}]} {
    %c0 = arith.constant 0 : index
    %c0_0 = arith.constant 0 : index
    %0 = vector.load %arg1[%c0, %c0_0] : memref<8x32xf32, #tpu.memory_space<vmem>>, vector<8x32xf32>
    %c0_1 = arith.constant 0 : index
    %c0_2 = arith.constant 0 : index
    %1 = vector.load %arg2[%c0_1, %c0_2] : memref<32x64xf32, #tpu.memory_space<vmem>>, vector<32x64xf32>
    %c0_3 = arith.constant 0 : index
    %c0_4 = arith.constant 0 : index
    %2 = vector.load %arg3[%c0_3, %c0_4] : memref<1x64xf32, #tpu.memory_space<vmem>>, vector<1x64xf32>
    %cst = arith.constant dense<0.000000e+00> : vector<8x64xf32>
    %3 = tpu.matmul %0, %1, %cst {dimension_numbers = #tpu.dot_dimension_numbers<[1], [0], [0], [1], [0, 0, 1, 1], [], []>} : vector<8x32xf32>, vector<32x64xf32>, vector<8x64xf32> -> vector<8x64xf32>
    %4 = vector.broadcast %2 : vector<1x64xf32> to vector<8x64xf32>
    %5 = arith.addf %3, %4 : vector<8x64xf32>
    %cst_5 = arith.constant 0.000000e+00 : f32
    %6 = vector.broadcast %cst_5 : f32 to vector<8x64xf32>
    %7 = arith.cmpf ogt, %5, %6 : vector<8x64xf32>
    %cst_6 = arith.constant 3.000000e-01 : f32
    %8 = vector.broadcast %cst_6 : f32 to vector<8x64xf32>
    %9 = arith.mulf %8, %5 : vector<8x64xf32>
    %10 = arith.select %7, %5, %9 : vector<8x64xi1>, vector<8x64xf32>
    %c0_7 = arith.constant 0 : index
    %c0_8 = arith.constant 0 : index
    %11 = vector.load %arg4[%c0_7, %c0_8] : memref<64x48xf32, #tpu.memory_space<vmem>>, vector<64x48xf32>
    %c0_9 = arith.constant 0 : index
    %c0_10 = arith.constant 0 : index
    %12 = vector.load %arg5[%c0_9, %c0_10] : memref<1x48xf32, #tpu.memory_space<vmem>>, vector<1x48xf32>
    %cst_11 = arith.constant dense<0.000000e+00> : vector<8x48xf32>
    %13 = tpu.matmul %10, %11, %cst_11 {dimension_numbers = #tpu.dot_dimension_numbers<[1], [0], [0], [1], [0, 0, 1, 1], [], []>} : vector<8x64xf32>, vector<64x48xf32>, vector<8x48xf32> -> vector<8x48xf32>
    %14 = vector.broadcast %12 : vector<1x48xf32> to vector<8x48xf32>
    %15 = arith.addf %13, %14 : vector<8x48xf32>
    %cst_12 = arith.constant 0.000000e+00 : f32
    %16 = vector.broadcast %cst_12 : f32 to vector<8x48xf32>
    %17 = arith.cmpf ogt, %15, %16 : vector<8x48xf32>
    %cst_13 = arith.constant 3.000000e-01 : f32
    %18 = vector.broadcast %cst_13 : f32 to vector<8x48xf32>
    %19 = arith.mulf %18, %15 : vector<8x48xf32>
    %20 = arith.select %17, %15, %19 : vector<8x48xi1>, vector<8x48xf32>
    %c0_14 = arith.constant 0 : index
    %c0_15 = arith.constant 0 : index
    %21 = vector.load %arg6[%c0_14, %c0_15] : memref<48x128xf32, #tpu.memory_space<vmem>>, vector<48x128xf32>
    %c0_16 = arith.constant 0 : index
    %c0_17 = arith.constant 0 : index
    %22 = vector.load %arg7[%c0_16, %c0_17] : memref<1x128xf32, #tpu.memory_space<vmem>>, vector<1x128xf32>
    %cst_18 = arith.constant dense<0.000000e+00> : vector<8x128xf32>
    %23 = tpu.matmul %20, %21, %cst_18 {dimension_numbers = #tpu.dot_dimension_numbers<[1], [0], [0], [1], [0, 0, 1, 1], [], []>} : vector<8x48xf32>, vector<48x128xf32>, vector<8x128xf32> -> vector<8x128xf32>
    %24 = vector.broadcast %22 : vector<1x128xf32> to vector<8x128xf32>
    %25 = arith.addf %23, %24 : vector<8x128xf32>
    %cst_19 = arith.constant 0.000000e+00 : f32
    %26 = vector.broadcast %cst_19 : f32 to vector<8x128xf32>
    %27 = arith.cmpf ogt, %25, %26 : vector<8x128xf32>
    %cst_20 = arith.constant 3.000000e-01 : f32
    %28 = vector.broadcast %cst_20 : f32 to vector<8x128xf32>
    %29 = arith.mulf %28, %25 : vector<8x128xf32>
    %30 = arith.select %27, %25, %29 : vector<8x128xi1>, vector<8x128xf32>
    %c0_21 = arith.constant 0 : index
    %c0_22 = arith.constant 0 : index
    %31 = vector.load %arg8[%c0_21, %c0_22] : memref<8x128xf32, #tpu.memory_space<vmem>>, vector<8x128xf32>
    tpu.vector_store %arg8[%c0_21, %c0_22], %30 {strides = array<i32>} : memref<8x128xf32, #tpu.memory_space<vmem>>, vector<8x128xf32>,
    return
  }
  func.func @transform_0(%arg0: i32) -> (i32, i32) {
    %c0_i32 = arith.constant 0 : i32
    %c0_i32_0 = arith.constant 0 : i32
    return %arg0, %c0_i32 : i32, i32
  }
  func.func @transform_1(%arg0: i32) -> (i32, i32) {
    %c0_i32 = arith.constant 0 : i32
    %c0_i32_0 = arith.constant 0 : i32
    %c0_i32_1 = arith.constant 0 : i32
    return %c0_i32, %c0_i32_0 : i32, i32
  }
  func.func @transform_2(%arg0: i32) -> (i32, i32) {
    %c0_i32 = arith.constant 0 : i32
    %c0_i32_0 = arith.constant 0 : i32
    %c0_i32_1 = arith.constant 0 : i32
    return %c0_i32, %c0_i32_0 : i32, i32
  }
  func.func @transform_3(%arg0: i32) -> (i32, i32) {
    %c0_i32 = arith.constant 0 : i32
    %c0_i32_0 = arith.constant 0 : i32
    %c0_i32_1 = arith.constant 0 : i32
    return %c0_i32, %c0_i32_0 : i32, i32
  }
  func.func @transform_4(%arg0: i32) -> (i32, i32) {
    %c0_i32 = arith.constant 0 : i32
    %c0_i32_0 = arith.constant 0 : i32
    %c0_i32_1 = arith.constant 0 : i32
    return %c0_i32, %c0_i32_0 : i32, i32
  }
  func.func @transform_5(%arg0: i32) -> (i32, i32) {
    %c0_i32 = arith.constant 0 : i32
    %c0_i32_0 = arith.constant 0 : i32
    %c0_i32_1 = arith.constant 0 : i32
    return %c0_i32, %c0_i32_0 : i32, i32
  }
  func.func @transform_6(%arg0: i32) -> (i32, i32) {
    %c0_i32 = arith.constant 0 : i32
    %c0_i32_0 = arith.constant 0 : i32
    %c0_i32_1 = arith.constant 0 : i32
    return %c0_i32, %c0_i32_0 : i32, i32
  }
  func.func @transform_7(%arg0: i32) -> (i32, i32) {
    %c0_i32 = arith.constant 0 : i32
    %c0_i32_0 = arith.constant 0 : i32
    return %arg0, %c0_i32 : i32, i32
  }
}

</mosaic_0001>

<bundles_post_ra>
// kernel: tpu_custom_call.1
= control target key start
LH: loop header
LB: loop body
LE: loop exit
PB: predicated region body
PF: predicated region fallthrough
CT: control target
= control target key end

     0   :  { %v440_v3 = vmov 0.0|0.0   ;;  %vm441_vm0 = vmmov 0   ;;  %v442_v6 = vmov 0.0   ;;  %s565_s0 = inlined_call_operand.vmem [shape: f32[8,32], index: 0, kind: input, shape index: {}]   ;;  %s566_s1 = inlined_call_operand.vmem [shape: f32[32,64], index: 1, kind: input, shape index: {}]   ;;  %s567_s2 = inlined_call_operand.vmem [shape: f32[1,64], index: 2, kind: input, shape index: {}]   ;;  %s568_s3 = inlined_call_operand.vmem [shape: f32[64,48], index: 3, kind: input, shape index: {}]   ;;  %s569_s4 = inlined_call_operand.vmem [shape: f32[1,48], index: 4, kind: input, shape index: {}]   ;;  %s570_s5 = inlined_call_operand.vmem [shape: f32[48,128], index: 5, kind: input, shape index: {}]   ;;  %s571_s6 = inlined_call_operand.vmem [shape: f32[1,128], index: 6, kind: input, shape index: {}]   ;;  %s572_s7 = inlined_call_operand.hbm [shape: f32[8,128], index: 7, kind: output, shape index: {}]  }
   0x1   :  { %v28_v0 = vld [vmem:[%s566_s1] sm:$0xff]  ;;  %v29_v1 = vld [vmem:[%s566_s1 + $0x8] sm:$0xff]  ;;  %v30_v2 = vld [vmem:[%s566_s1 + $0x10] sm:$0xff]  ;;  %385 = vmatprep.subr.bf16.mxu0 %v440_v3  ;;  %348 = vmatprep.mubr.msk.f32.mxu0 %vm441_vm0, %v442_v6 }
   0x2   :  { %v386_v4 = vpack.c.bf16 %v29_v1, %v28_v0  ;;  %v31_v5 = vld [vmem:[%s566_s1 + $0x18] sm:$0xff]  ;;  %v116_v7 = vld [vmem:[%s568_s3] sm:$0xff]  ;;  %391 = vmatprep.subr.bf16.mxu1 %v440_v3  ;;  %v117_v8 = vld [vmem:[%s568_s3 + $0x8] sm:$0xff]  ;;  %367 = vmatprep.mubr.msk.f32.mxu1 %vm441_vm0, %v442_v6 }
   0x3   :  { %v118_v9 = vld [vmem:[%s568_s3 + $0x10] sm:$0xff]  ;;  %v119_v10 = vld [vmem:[%s568_s3 + $0x18] sm:$0xff]  ;;  %v389_v11 = vpack.c.bf16 %v31_v5, %v30_v2  ;;  %v392_v12 = vpack.c.bf16 %v117_v8, %v116_v7 }
   0x4   :  { %387 = vmatpush3.bf16.msra.mxu0 %v386_v4 }
   0x5   :  { %388 = vmatprep.subr.bf16.mxu0 %v440_v3 }
   0x6   :  { %12 = vsyncpa [#allocation3], 0  ;;  %393 = vmatpush3.bf16.msra.mxu1 %v392_v12  ;;  %v395_v13 = vpack.c.bf16 %v119_v10, %v118_v9  ;;  %v120_v14 = vld [vmem:[%s568_s3 + $0x20] sm:$0xff]  ;;  %v121_v15 = vld [vmem:[%s568_s3 + $0x28] sm:$0xff]  ;;  %vm39_vm1 = vcmask 261120   ;;  %vm131_vm3 = vcmask 523264  }
   0x7   :  { %394 = vmatprep.subr.bf16.mxu1 %v440_v3  ;;  %v27_v16 = vld [vmem:[%s565_s0] sm:$0xff]  ;;  %v398_v17 = vpack.c.bf16 %v121_v15, %v120_v14  ;;  %v122_v18 = vld [vmem:[%s568_s3 + $0x30] sm:$0xff]  ;;  %v123_v19 = vld [vmem:[%s568_s3 + $0x38] sm:$0xff]  ;;  %vm221_vm5 = vcmask 392192  }
   0x8   :  { %390 = vmatpush3.bf16.msra.mxu0 %v389_v11  ;;  %v401_v20 = vpack.c.bf16 %v123_v19, %v122_v18  ;;  %v208_v21 = vld [vmem:[%s570_s5] sm:$0xff]  ;;  %v209_v22 = vld [vmem:[%s570_s5 + $0x8] sm:$0xff]  ;;  %v210_v23 = vld [vmem:[%s570_s5 + $0x10] sm:$0xff] }
   0x9   :  { %403 = vmatprep.subr.bf16.mxu0 %v440_v3  ;;  %v404_v24 = vpack.c.bf16 %v209_v22, %v208_v21  ;;  %v211_v25 = vld [vmem:[%s570_s5 + $0x18] sm:$0xff]  ;;  %v313_v27 = vld [vmem:[%s567_s2] ss:$0 sm:$0xff]  ;;  %v213_v34 = vld [vmem:[%s570_s5 + $0x28] sm:$0xff] }
   0xa   :  { %396 = vmatpush3.bf16.msra.mxu1 %v395_v13  ;;  %v407_v26 = vpack.c.bf16 %v211_v25, %v210_v23  ;;  %v212_v33 = vld [vmem:[%s570_s5 + $0x20] sm:$0xff]  ;;  %s443_s5 = smov [#allocation2]  }
   0xb   :  { %349 = vmatmul.mubr.msk.f32.vlgmr.msra.gmra.mrb[0].mxu0 %vm39_vm1, %v27_v16  ;;  %397 = vmatprep.subr.bf16.mxu1 %v440_v3  ;;  %v410_v35 = vpack.c.bf16 %v213_v34, %v212_v33  ;;  %v315_v36 = vld [vmem:[%s569_s4] ss:$0 sm:$0xff]  ;;  %s305_s17 = sshll.u32 %s443_s5, 4  ;;  %s306_s17 = int_to_ptr.vmem [resolvable:$true] %s305_s17 }
   0xc   :  { %382 = vmatprep.mubr.msk.f32.mxu0 %vm441_vm0, %v442_v6  ;;  %405 = vmatpush3.bf16.msra.mxu0 %v404_v24  ;;  %v317_v42 = vld [vmem:[%s571_s6] ss:$0 sm:$0xff]  ;;  %s416_s4 = scalar_lea.vmem %s306_s17, 128  ;;  %p421_p1 = scmp.lt.s32.totalorder %s306_s17, %s306_s17 }
   0xd   :  { %406 = vmatprep.subr.bf16.mxu0 %v440_v3  ;;  %p417_p0 = scmp.ne.s32.totalorder %s306_s17, %s416_s4  ;;  %p422_p2 = scmp.lt.s32.totalorder %s416_s4, %s416_s4 }
   0xe   :  { %399 = vmatpush3.bf16.msra.mxu1 %v398_v17 }
   0xf   :  { %400 = vmatprep.subr.bf16.mxu1 %v440_v3  ;;  %p423_p3 = por %p422_p2, %p421_p1 }
  0x10   :  { %408 = vmatpush3.bf16.msra.mxu0 %v407_v26 }
  0x11   :  { %409 = vmatprep.subr.bf16.mxu0 %v440_v3  ;;  %p424_p4 = pnand %p423_p3, %p417_p0 }
  0x12   :  { %402 = vmatpush3.bf16.msra.mxu1 %v401_v20 }
  0x14   :  { %411 = vmatpush3.bf16.msra.mxu0 %v410_v35 }
  0xde   :  { %v109_v28 = vpop.f32.mrb[0].mxu0 }
  0xdf   :  { %v110_v29 = vadd.f32 %v313_v27, %v109_v28  ;;  %v350_v30 = vpop.f32.mrb[1].mxu0 }
  0xe1   :  { %vm113_vm2 = vcmp.gt.f32.partialorder %v110_v29, 0.0  ;;  %v114_v31 = vmul.f32 0.3, %v110_v29 }
  0xe3   :  { %v115_v32 = vsel %vm113_vm2, %v110_v29, %v114_v31 }
  0xe4   :  { %368 = vmatmul.mubr.msk.f32.vlgmr.msra.gmra.mrb[0].mxu1 %vm131_vm3, %v115_v32 }
 0x1b7   :  { %v201_v37 = vpop.f32.mrb[0].mxu1 }
 0x1b8   :  { %v202_v38 = vadd.f32 %v315_v36, %v201_v37  ;;  %v369_v39 = vpop.f32.mrb[1].mxu1 }
 0x1ba   :  { %vm205_vm4 = vcmp.gt.f32.partialorder %v202_v38, 0.0  ;;  %v206_v40 = vmul.f32 0.3, %v202_v38 }
 0x1bc   :  { %v207_v41 = vsel %vm205_vm4, %v202_v38, %v206_v40 }
 0x1bd   :  { %383 = vmatmul.mubr.msk.f32.vlgmr.msra.gmra.mrb[2].mxu0 %vm221_vm5, %v207_v41 }
 0x290   :  { %v291_v43 = vpop.f32.mrb[2].mxu0 }
 0x291   :  { %v292_v44 = vadd.f32 %v317_v42, %v291_v43  ;;  %v384_v45 = vpop.f32.mrb[3].mxu0 }
 0x293   :  { %v296_v46 = vmul.f32 0.3, %v292_v44  ;;  %vm295_vm6 = vcmp.gt.f32.partialorder %v292_v44, 0.0 }
 0x295   :  { %v297_v47 = vsel %vm295_vm6, %v292_v44, %v296_v46 }
 0x296   :  { %298 = vst [vmem:[#allocation2] sm:$0xff] %v297_v47 }
 0x297   :  { %427 = shalt.err (!%p424_p4)
}
 0x298   :  { %s428_s6 = scalar_lea.hbm %s572_s7, 128 }
 0x299   :  { %p429_p5 = scmp.ne.s32.totalorder %s572_s7, %s428_s6  ;;  %p432_p6 = scmp.lt.u32.totalorder %s428_s6, %s572_s7 }
 0x29b   :  { %p434_p7 = pnand %p432_p6, %p429_p5 }
 0x29d   :  { %437 = shalt.err (!%p434_p7)
}
 0x29e   :  { %308 = dma.vmem_to_hbm [thread:$0]  %s306_s17, 128, %s572_s7, [#allocation3]  }
 0x29f   :  { %438 = dma.done.wait [#allocation3], 128  }
 0x2a0   :  { %439 = vsyncadd [#allocation3], 4294967168 }
 0x2a1   :  { %312 = vsyncpa [#allocation3], 1 }

</bundles_post_ra>
